<compile_context>
chip_gen: v5e
topology: v5e:2x2
jax: 0.10.0
libtpu: 0.0.40
codegen_flags: <defaults>
</compile_context>

<pallas_src>
import jax
import jax.numpy as jnp
from jax import lax
from jax.experimental import pallas as pl
from jax.experimental.pallas import tpu as pltpu


def cross_align_kernel(bias_ref,                 # SMEM (1,)  b_c + b_q + b_cq
                       c_ref,                    # (TB, TC, D)   input dtype
                       q_ref,                    # (TB, Q,  D)   input dtype
                       qmask_ref,                # (TB, 1,  Q)   f32 (1 = valid)
                       wc_ref,                   # (1, D)
                       wcq_ref,                  # (1, D)
                       waug_ref,                 # (D+1, D) = [W_out ; w_q]
                       bout_ref,                 # (D, 1)   f32
                       out_ref,                  # (TB, D, TC)   transposed out
                       qs_ref,                   # VMEM (TB, Q, D)  q * w_cq
                       qwt_ref,                  # VMEM (TB, D, Q)  (q @ W_out^T)^T
                       sq_ref):                  # VMEM (TB, 1, Q)  w_q.q + bias
    tb, tc, d = c_ref.shape
    ci = pl.program_id(1)

    # ---- once per batch tile (ci == 0): hoist all q-side work into scratch --
    @pl.when(ci == 0)
    def _():
        wcq = wcq_ref[...].astype(jnp.float32)                       # (1, D)
        qs_ref[...] = (q_ref[...].astype(jnp.float32) * wcq).astype(qs_ref.dtype)
        # One small matmul per batch row yields both (q @ W_out^T)^T and the
        # q-side score term, already lane-major (no reduce-then-relayout).
        for i in range(tb):                                          # static unroll
            tmp = jnp.dot(waug_ref[...], q_ref[i].T,                 # (D+1, Q)
                          preferred_element_type=jnp.float32)
            qwt_ref[i] = tmp[:d, :].astype(qwt_ref.dtype)
            sq_ref[i] = tmp[d:, :] + bias_ref[0]

    # ---- per (batch-tile, c-tile) step ---------------------------------------
    c_blk = c_ref[...]                                               # native dtype
    cf = c_blk.astype(jnp.float32)
    s_c = jnp.sum(cf * wc_ref[...].astype(jnp.float32),
                  axis=-1, keepdims=True)                            # (TB, TC, 1)

    # scores: one batched MXU pass, contraction on the last dims (no q.T relayout)
    cq = lax.dot_general(c_blk, qs_ref[...],
                         dimension_numbers=(((2,), (2,)), ((0,), (0,))),
                         preferred_element_type=jnp.float32)         # (TB, TC, Q)
    s = cq + s_c + sq_ref[...]
    s = jnp.clip(s, -15.0, 15.0)
    # float == 0 matches the PyTorch (q_mask == 0) semantics; mask is exact 0/1.
    s = jnp.where(qmask_ref[...] == 0, -jnp.inf, s)

    # softmax over q; max-subtraction dropped (|s| <= 15 after the clip, masked
    # entries give exp(-inf) = 0).  Exact reciprocal keeps 1e-4 parity.
    e = jnp.exp(s)
    a = e * pl.reciprocal(jnp.sum(e, axis=-1, keepdims=True))
    a = a.astype(qwt_ref.dtype)                                      # bf16-safe MXU feed

    # fused attention + output projection, produced directly as (TB, D, TC) so
    # the HBM store is lane-dense even when D < 128.
    y = lax.dot_general(qwt_ref[...], a,
                        dimension_numbers=(((2,), (2,)), ((0,), (0,))),
                        preferred_element_type=jnp.float32)          # (TB, D, TC)
    out_ref[...] = (y + bout_ref[...][None]).astype(out_ref.dtype)


def _pad_axis(x, axis, new_size, value=0.0):
    pad = new_size - x.shape[axis]
    if pad <= 0:
        return x
    cfg = [(0, 0)] * x.ndim
    cfg[axis] = (0, pad)
    return jnp.pad(x, cfg, constant_values=value)


def _vmem_estimate(tb, tc, q_len, d, itemsize):
    """Rough upper bound (bytes) of VMEM residency, with (8, 128) tile padding."""
    def cnt(r, c):
        return (8 * pl.cdiv(max(r, 1), 8)) * (128 * pl.cdiv(max(c, 1), 128))
    f32 = 4
    blocks = 2 * tb * (itemsize * cnt(tc, d)        # c (double-buffered)
                       + itemsize * cnt(q_len, d)   # q
                       + f32 * cnt(1, q_len)        # mask
                       + itemsize * cnt(d, tc))     # out (transposed)
    scratch = tb * (itemsize * cnt(q_len, d)        # q * w_cq
                    + itemsize * cnt(d, q_len)      # (q @ W_out^T)^T
                    + f32 * cnt(1, q_len))          # s_q + bias
    interm = f32 * tb * (4 * cnt(tc, q_len)         # cq / s / e / a
                         + cnt(tc, d) + cnt(d, tc)) # f32 c tile + y
    weights = f32 * (2 * cnt(1, d) + cnt(d + 1, d) + cnt(d, 1))
    return blocks + scratch + interm + weights


def _select_tiles(B, c_len, q_len, d, itemsize, vmem_cap):
    """q_len- and generation-aware (TB, TC): largest tiles fitting ~1/2 VMEM.

    TC is a multiple of 128 or covers the whole padded c axis (lane-friendly
    output); TB keeps >= 2 batch grid points so megacore can split on batch.
    """
    full_tc = max(8, 8 * pl.cdiv(c_len, 8))
    tc_opts = [full_tc] + [t for t in (1024, 512, 256, 128) if t < full_tc]
    tb_opts = [t for t in (8, 4, 2, 1) if t <= max(1, B // 2)] or [1]
    budget = vmem_cap // 2
    for tb in tb_opts:
        for tc in tc_opts:
            if _vmem_estimate(tb, tc, q_len, d, itemsize) <= budget:
                return tb, tc
    return 1, full_tc if full_tc < 128 else 128


def cross_align_matrix(c, q, q_mask, params, *, tb=None, tc=None):
    B, c_len, D = c.shape
    _, q_len, _ = q.shape
    dtype = c.dtype
    isz = jnp.dtype(dtype).itemsize

    # --- generation-aware VMEM capacity (64 MiB/TC on v7x, 128 MiB v5e/v6e) ---
    try:
        vmem_cap = int(getattr(pltpu.get_tpu_info(), "vmem_capacity_bytes",
                               64 * 1024 * 1024))
    except Exception:
        vmem_cap = 64 * 1024 * 1024

    if tb is None or tc is None:
        tb_sel, tc_sel = _select_tiles(B, c_len, q_len, D, isz, vmem_cap)
        tb = tb_sel if tb is None else tb
        tc = tc_sel if tc is None else tc
    b_pad = pl.cdiv(B, tb) * tb
    c_pad = pl.cdiv(c_len, tc) * tc

    # --- wrapper-side padding / param prep ------------------------------------
    c_p = _pad_axis(_pad_axis(c, 1, c_pad), 0, b_pad)
    q_p = _pad_axis(q, 0, b_pad)
    # Padded batch rows get mask = 1 (valid) so no all -inf softmax rows.
    qmask3 = _pad_axis(q_mask.astype(jnp.float32), 0, b_pad,
                       value=1.0).reshape(b_pad, 1, q_len)

    w_c = params["w_c"].astype(dtype)                                  # (1, D)
    w_cq = params["w_cq"].astype(dtype)                                # (1, D)
    # Augmented weight [W_out ; w_q]: one per-batch matmul yields both the
    # projected queries and the q-side score term.
    w_aug = jnp.concatenate([params["w_out"], params["w_q"]], axis=0).astype(dtype)
    b_out = params["b_out"].reshape(D, 1).astype(jnp.float32)
    bias_total = (params["b_c"] + params["b_q"] + params["b_cq"]
                  ).reshape(1).astype(jnp.float32)

    est = _vmem_estimate(tb, tc, q_len, D, isz)
    vmem_limit = int(min(max(2 * est, 32 * 1024 * 1024), int(0.8 * vmem_cap)))

    grid = (b_pad // tb, c_pad // tc)
    grid_spec = pltpu.PrefetchScalarGridSpec(
        num_scalar_prefetch=0,
        grid=grid,
        in_specs=[
            pl.BlockSpec(memory_space=pltpu.MemorySpace.SMEM),           # bias
            # NOTE: add pipeline_mode=pl.Buffered(3) on the c spec only if a
            # profile shows the per-ci c-tile DMA exposed.
            pl.BlockSpec((tb, tc, D), lambda bi, ci: (bi, ci, 0)),       # c
            pl.BlockSpec((tb, q_len, D), lambda bi, ci: (bi, 0, 0)),     # q
            pl.BlockSpec((tb, 1, q_len), lambda bi, ci: (bi, 0, 0)),     # q_mask
            pl.BlockSpec((1, D), lambda bi, ci: (0, 0)),                 # w_c
            pl.BlockSpec((1, D), lambda bi, ci: (0, 0)),                 # w_cq
            pl.BlockSpec((D + 1, D), lambda bi, ci: (0, 0)),             # [W_out; w_q]
            pl.BlockSpec((D, 1), lambda bi, ci: (0, 0)),                 # b_out
        ],
        out_specs=pl.BlockSpec((tb, D, tc), lambda bi, ci: (bi, 0, ci)),
        scratch_shapes=[
            pltpu.VMEM((tb, q_len, D), dtype),        # q * w_cq
            pltpu.VMEM((tb, D, q_len), dtype),        # (q @ W_out^T)^T
            pltpu.VMEM((tb, 1, q_len), jnp.float32),  # s_q + bias
        ],
    )

    out_t = pl.pallas_call(
        cross_align_kernel,
        out_shape=jax.ShapeDtypeStruct((b_pad, D, c_pad), dtype),
        grid_spec=grid_spec,
        compiler_params=pltpu.CompilerParams(
            dimension_semantics=("parallel", "arbitrary"),
            vmem_limit_bytes=vmem_limit),
    )(bias_total, c_p, q_p, qmask3, w_c, w_cq, w_aug, b_out)

    # (b_pad, D, c_pad) -> (B, c_len, D): layout plumbing only.
    return jnp.transpose(out_t[:B, :, :c_len], (0, 2, 1))


def reference(c, q, q_mask, p):
    """Plain-JAX replica of the PyTorch forward (for verification)."""
    s_c = c @ p["w_c"].T + p["b_c"]                       # (B, C, 1)
    s_q = q @ p["w_q"].T + p["b_q"]                       # (B, Q, 1)
    cq = jnp.einsum("bcd,bqd->bcq", c * p["w_cq"][0], q) + p["b_cq"]
    s = s_c + jnp.transpose(s_q, (0, 2, 1)) + cq
    s = jnp.clip(s, -15.0, 15.0)
    s = jnp.where((q_mask == 0)[:, None, :], -jnp.inf, s)
    a = jax.nn.softmax(s, axis=2)
    x = jnp.einsum("bcq,bqd->bcd", a, q)
    return x @ p["w_out"].T + p["b_out"]


if __name__ == "__main__":
    B, c_len, q_len = 2, 16, 8
    in_dim = out_dim = 32   # hidden_dim == 1 is implied by the module's forward

    key = jax.random.PRNGKey(0)
    ks = jax.random.split(key, 12)

    c = jax.random.normal(ks[0], (B, c_len, in_dim), jnp.float32)
    q = jax.random.normal(ks[1], (B, q_len, in_dim), jnp.float32)
    # q_mask: 1 = valid, 0 = padded (last two query positions of batch 1 padded)
    q_mask = jnp.ones((B, q_len), jnp.float32).at[1, q_len - 2:].set(0.0)

    def lin_init(k, out_f, in_f):
        bound = 1.0 / (in_f ** 0.5)
        kw, kb = jax.random.split(k)
        w = jax.random.uniform(kw, (out_f, in_f), jnp.float32, -bound, bound)
        b = jax.random.uniform(kb, (out_f,), jnp.float32, -bound, bound)
        return w, b

    w_c, b_c = lin_init(ks[2], 1, in_dim)        # att_weight_c  (hidden_dim=1)
    w_q, b_q = lin_init(ks[3], 1, in_dim)        # att_weight_q
    w_cq, b_cq = lin_init(ks[4], 1, in_dim)      # att_weight_cq
    w_out, b_out = lin_init(ks[5], out_dim, out_dim)  # align_output
    # TODO(synk): self.layer_norm is defined in __init__ but never used in forward; omitted.

    params = dict(w_c=w_c, b_c=b_c, w_q=w_q, b_q=b_q, w_cq=w_cq, b_cq=b_cq,
                  w_out=w_out, b_out=b_out)

    out = cross_align_matrix(c, q, q_mask, params)
    out = jax.block_until_ready(out)

    ref = reference(c, q, q_mask, params)
    assert out.shape == (B, c_len, out_dim)
    assert jnp.allclose(out, ref, atol=1e-4, rtol=1e-4), \
        f"mismatch: max abs err {jnp.max(jnp.abs(out - ref))}"

    print("KERNEL_OK")
</pallas_src>

<mosaic_0001>
module attributes {stable_mosaic.version = 11 : i64} {
  func.func @cross_align_kernel(%arg0: i32, %arg1: i32, %arg2: memref<1xf32, #tpu.memory_space<smem>>, %arg3: memref<1x16x32xf32, #tpu.memory_space<vmem>>, %arg4: memref<1x8x32xf32, #tpu.memory_space<vmem>>, %arg5: memref<1x1x8xf32, #tpu.memory_space<vmem>>, %arg6: memref<1x32xf32, #tpu.memory_space<vmem>>, %arg7: memref<1x32xf32, #tpu.memory_space<vmem>>, %arg8: memref<33x32xf32, #tpu.memory_space<vmem>>, %arg9: memref<32x1xf32, #tpu.memory_space<vmem>>, %arg10: memref<1x32x16xf32, #tpu.memory_space<vmem>>, %arg11: memref<1x8x32xf32, #tpu.memory_space<vmem>>, %arg12: memref<1x32x8xf32, #tpu.memory_space<vmem>>, %arg13: memref<1x1x8xf32, #tpu.memory_space<vmem>>) attributes {dimension_semantics = [#tpu.dimension_semantics<parallel>, #tpu.dimension_semantics<arbitrary>], iteration_bounds = array<i64: 2, 1>, scalar_prefetch = 0 : i64, scratch_operands = 3 : i64, tpu.core_type = #tpu.core_type<tc>, window_params = [{transform_indices = @transform_0, window_bounds = array<i64: 1>}, {transform_indices = @transform_1, window_bounds = array<i64: 1, 16, 32>}, {transform_indices = @transform_2, window_bounds = array<i64: 1, 8, 32>}, {transform_indices = @transform_3, window_bounds = array<i64: 1, 1, 8>}, {pipeline_mode = #tpu.pipeline_mode<synchronous>, transform_indices = @transform_4, window_bounds = array<i64: 1, 32>}, {pipeline_mode = #tpu.pipeline_mode<synchronous>, transform_indices = @transform_5, window_bounds = array<i64: 1, 32>}, {pipeline_mode = #tpu.pipeline_mode<synchronous>, transform_indices = @transform_6, window_bounds = array<i64: 33, 32>}, {pipeline_mode = #tpu.pipeline_mode<synchronous>, transform_indices = @transform_7, window_bounds = array<i64: 32, 1>}, {transform_indices = @transform_8, window_bounds = array<i64: 1, 32, 16>}]} {
    %c0_i32 = arith.constant 0 : i32
    %0 = arith.cmpi eq, %arg1, %c0_i32 : i32
    %1 = arith.extui %0 : i1 to i32
    %c0_i32_0 = arith.constant 0 : i32
    %2 = arith.cmpi ne, %1, %c0_i32_0 : i32
    scf.if %2 {
      %c0_29 = arith.constant 0 : index
      %c0_30 = arith.constant 0 : index
      %41 = vector.load %arg7[%c0_29, %c0_30] : memref<1x32xf32, #tpu.memory_space<vmem>>, vector<1x32xf32>
      %c0_31 = arith.constant 0 : index
      %c0_32 = arith.constant 0 : index
      %c0_33 = arith.constant 0 : index
      %42 = vector.load %arg4[%c0_31, %c0_32, %c0_33] : memref<1x8x32xf32, #tpu.memory_space<vmem>>, vector<1x8x32xf32>
      %43 = vector.shape_cast %41 : vector<1x32xf32> to vector<1x1x32xf32>
      %44 = vector.broadcast %43 : vector<1x1x32xf32> to vector<1x8x32xf32>
      %45 = arith.mulf %42, %44 : vector<1x8x32xf32>
      %c0_34 = arith.constant 0 : index
      %c0_35 = arith.constant 0 : index
      %c0_36 = arith.constant 0 : index
      %46 = vector.load %arg11[%c0_34, %c0_35, %c0_36] : memref<1x8x32xf32, #tpu.memory_space<vmem>>, vector<1x8x32xf32>
      tpu.vector_store %arg11[%c0_34, %c0_35, %c0_36], %45 {strides = array<i32>} : memref<1x8x32xf32, #tpu.memory_space<vmem>>, vector<1x8x32xf32>,
      %c0_37 = arith.constant 0 : index
      %c0_38 = arith.constant 0 : index
      %47 = vector.load %arg8[%c0_37, %c0_38] : memref<33x32xf32, #tpu.memory_space<vmem>>, vector<33x32xf32>
      %c0_39 = arith.constant 0 : index
      %c0_40 = arith.constant 0 : index
      %c0_41 = arith.constant 0 : index
      %48 = vector.load %arg4[%c0_39, %c0_40, %c0_41] : memref<1x8x32xf32, #tpu.memory_space<vmem>>, vector<1x8x32xf32>
      %49 = vector.shape_cast %48 : vector<1x8x32xf32> to vector<8x32xf32>
      %50 = tpu.transpose %49, [1, 0] : vector<8x32xf32> -> vector<32x8xf32>
      %cst_42 = arith.constant dense<0.000000e+00> : vector<33x8xf32>
      %51 = tpu.matmul %47, %50, %cst_42 {dimension_numbers = #tpu.dot_dimension_numbers<[1], [0], [0], [1], [0, 0, 1, 1], [], []>} : vector<33x32xf32>, vector<32x8xf32>, vector<33x8xf32> -> vector<33x8xf32>
      %52 = vector.extract_strided_slice %51 {offsets = [0, 0], sizes = [32, 8], strides = [1, 1]} : vector<33x8xf32> to vector<32x8xf32>
      %c0_43 = arith.constant 0 : index
      %c0_44 = arith.constant 0 : index
      %c0_45 = arith.constant 0 : index
      %53 = vector.load %arg12[%c0_43, %c0_44, %c0_45] : memref<1x32x8xf32, #tpu.memory_space<vmem>>, vector<1x32x8xf32>
      %54 = vector.shape_cast %53 : vector<1x32x8xf32> to vector<32x8xf32>
      %55 = vector.shape_cast %52 : vector<32x8xf32> to vector<1x32x8xf32>
      tpu.vector_store %arg12[%c0_43, %c0_44, %c0_45], %55 {strides = array<i32>} : memref<1x32x8xf32, #tpu.memory_space<vmem>>, vector<1x32x8xf32>,
      %56 = vector.extract_strided_slice %51 {offsets = [32, 0], sizes = [1, 8], strides = [1, 1]} : vector<33x8xf32> to vector<1x8xf32>
      %c0_46 = arith.constant 0 : index
      %57 = memref.load %arg2[%c0_46] : memref<1xf32, #tpu.memory_space<smem>>
      %58 = vector.broadcast %57 : f32 to vector<1x8xf32>
      %59 = arith.addf %56, %58 : vector<1x8xf32>
      %c0_47 = arith.constant 0 : index
      %c0_48 = arith.constant 0 : index
      %c0_49 = arith.constant 0 : index
      %60 = vector.load %arg13[%c0_47, %c0_48, %c0_49] : memref<1x1x8xf32, #tpu.memory_space<vmem>>, vector<1x1x8xf32>
      %61 = vector.shape_cast %60 : vector<1x1x8xf32> to vector<1x8xf32>
      %62 = vector.shape_cast %59 : vector<1x8xf32> to vector<1x1x8xf32>
      tpu.vector_store %arg13[%c0_47, %c0_48, %c0_49], %62 {strides = array<i32>} : memref<1x1x8xf32, #tpu.memory_space<vmem>>, vector<1x1x8xf32>,
    } else {
    }
    %c0 = arith.constant 0 : index
    %c0_1 = arith.constant 0 : index
    %c0_2 = arith.constant 0 : index
    %3 = vector.load %arg3[%c0, %c0_1, %c0_2] : memref<1x16x32xf32, #tpu.memory_space<vmem>>, vector<1x16x32xf32>
    %c0_3 = arith.constant 0 : index
    %c0_4 = arith.constant 0 : index
    %4 = vector.load %arg6[%c0_3, %c0_4] : memref<1x32xf32, #tpu.memory_space<vmem>>, vector<1x32xf32>
    %5 = vector.shape_cast %4 : vector<1x32xf32> to vector<1x1x32xf32>
    %6 = vector.broadcast %5 : vector<1x1x32xf32> to vector<1x16x32xf32>
    %7 = arith.mulf %3, %6 : vector<1x16x32xf32>
    %cst = arith.constant dense<0.000000e+00> : vector<1x16xf32>
    %8 = vector.multi_reduction <add>, %7, %cst [2] : vector<1x16x32xf32> to vector<1x16xf32>
    %9 = vector.shape_cast %8 : vector<1x16xf32> to vector<1x16x1xf32>
    %c0_5 = arith.constant 0 : index
    %c0_6 = arith.constant 0 : index
    %c0_7 = arith.constant 0 : index
    %10 = vector.load %arg11[%c0_5, %c0_6, %c0_7] : memref<1x8x32xf32, #tpu.memory_space<vmem>>, vector<1x8x32xf32>
    %cst_8 = arith.constant dense<0.000000e+00> : vector<1x16x8xf32>
    %11 = tpu.matmul %3, %10, %cst_8 {dimension_numbers = #tpu.dot_dimension_numbers<[2], [2], [1], [1], [0, 0, 0, 1, 1, 1], [0], [0]>} : vector<1x16x32xf32>, vector<1x8x32xf32>, vector<1x16x8xf32> -> vector<1x16x8xf32>
    %12 = vector.broadcast %9 : vector<1x16x1xf32> to vector<1x16x8xf32>
    %13 = arith.addf %11, %12 : vector<1x16x8xf32>
    %c0_9 = arith.constant 0 : index
    %c0_10 = arith.constant 0 : index
    %c0_11 = arith.constant 0 : index
    %14 = vector.load %arg13[%c0_9, %c0_10, %c0_11] : memref<1x1x8xf32, #tpu.memory_space<vmem>>, vector<1x1x8xf32>
    %15 = vector.broadcast %14 : vector<1x1x8xf32> to vector<1x16x8xf32>
    %16 = arith.addf %13, %15 : vector<1x16x8xf32>
    %cst_12 = arith.constant -1.500000e+01 : f32
    %cst_13 = arith.constant 1.500000e+01 : f32
    %17 = vector.broadcast %cst_12 : f32 to vector<1x16x8xf32>
    %18 = arith.maximumf %17, %16 : vector<1x16x8xf32>
    %19 = vector.broadcast %cst_13 : f32 to vector<1x16x8xf32>
    %20 = arith.minimumf %19, %18 : vector<1x16x8xf32>
    %c0_14 = arith.constant 0 : index
    %c0_15 = arith.constant 0 : index
    %c0_16 = arith.constant 0 : index
    %21 = vector.load %arg5[%c0_14, %c0_15, %c0_16] : memref<1x1x8xf32, #tpu.memory_space<vmem>>, vector<1x1x8xf32>
    %cst_17 = arith.constant 0.000000e+00 : f32
    %22 = vector.broadcast %cst_17 : f32 to vector<1x1x8xf32>
    %23 = arith.cmpf oeq, %21, %22 : vector<1x1x8xf32>
    %cst_18 = arith.constant 0xFF800000 : f32
    %24 = vector.shape_cast %23 : vector<1x1x8xi1> to vector<1x1x8xi1>
    %25 = vector.broadcast %24 : vector<1x1x8xi1> to vector<1x16x8xi1>
    %26 = vector.broadcast %cst_18 : f32 to vector<1x16x8xf32>
    %27 = arith.select %25, %26, %20 : vector<1x16x8xi1>, vector<1x16x8xf32>
    %28 = math.exp %27 : vector<1x16x8xf32>
    %cst_19 = arith.constant dense<0.000000e+00> : vector<1x16xf32>
    %29 = vector.multi_reduction <add>, %28, %cst_19 [2] : vector<1x16x8xf32> to vector<1x16xf32>
    %30 = vector.shape_cast %29 : vector<1x16xf32> to vector<1x16x1xf32>
    %31 = tpu.reciprocal %30 : vector<1x16x1xf32> -> vector<1x16x1xf32>
    %32 = vector.broadcast %31 : vector<1x16x1xf32> to vector<1x16x8xf32>
    %33 = arith.mulf %28, %32 : vector<1x16x8xf32>
    %c0_20 = arith.constant 0 : index
    %c0_21 = arith.constant 0 : index
    %c0_22 = arith.constant 0 : index
    %34 = vector.load %arg12[%c0_20, %c0_21, %c0_22] : memref<1x32x8xf32, #tpu.memory_space<vmem>>, vector<1x32x8xf32>
    %cst_23 = arith.constant dense<0.000000e+00> : vector<1x32x16xf32>
    %35 = tpu.matmul %34, %33, %cst_23 {dimension_numbers = #tpu.dot_dimension_numbers<[2], [2], [1], [1], [0, 0, 0, 1, 1, 1], [0], [0]>} : vector<1x32x8xf32>, vector<1x16x8xf32>, vector<1x32x16xf32> -> vector<1x32x16xf32>
    %c0_24 = arith.constant 0 : index
    %c0_25 = arith.constant 0 : index
    %36 = vector.load %arg9[%c0_24, %c0_25] : memref<32x1xf32, #tpu.memory_space<vmem>>, vector<32x1xf32>
    %37 = vector.shape_cast %36 : vector<32x1xf32> to vector<1x32x1xf32>
    %38 = vector.broadcast %37 : vector<1x32x1xf32> to vector<1x32x16xf32>
    %39 = arith.addf %35, %38 : vector<1x32x16xf32>
    %c0_26 = arith.constant 0 : index
    %c0_27 = arith.constant 0 : index
    %c0_28 = arith.constant 0 : index
    %40 = vector.load %arg10[%c0_26, %c0_27, %c0_28] : memref<1x32x16xf32, #tpu.memory_space<vmem>>, vector<1x32x16xf32>
    tpu.vector_store %arg10[%c0_26, %c0_27, %c0_28], %39 {strides = array<i32>} : memref<1x32x16xf32, #tpu.memory_space<vmem>>, vector<1x32x16xf32>,
    return
  }
  func.func @transform_0(%arg0: i32, %arg1: i32) -> i32 {
    %c0_i32 = arith.constant 0 : i32
    %c0_i32_0 = arith.constant 0 : i32
    return %c0_i32 : i32
  }
  func.func @transform_1(%arg0: i32, %arg1: i32) -> (i32, i32, i32) {
    %c0_i32 = arith.constant 0 : i32
    %c0_i32_0 = arith.constant 0 : i32
    return %arg0, %arg1, %c0_i32 : i32, i32, i32
  }
  func.func @transform_2(%arg0: i32, %arg1: i32) -> (i32, i32, i32) {
    %c0_i32 = arith.constant 0 : i32
    %c0_i32_0 = arith.constant 0 : i32
    %c0_i32_1 = arith.constant 0 : i32
    return %arg0, %c0_i32, %c0_i32_0 : i32, i32, i32
  }
  func.func @transform_3(%arg0: i32, %arg1: i32) -> (i32, i32, i32) {
    %c0_i32 = arith.constant 0 : i32
    %c0_i32_0 = arith.constant 0 : i32
    %c0_i32_1 = arith.constant 0 : i32
    return %arg0, %c0_i32, %c0_i32_0 : i32, i32, i32
  }
  func.func @transform_4(%arg0: i32, %arg1: i32) -> (i32, i32) {
    %c0_i32 = arith.constant 0 : i32
    %c0_i32_0 = arith.constant 0 : i32
    %c0_i32_1 = arith.constant 0 : i32
    return %c0_i32, %c0_i32_0 : i32, i32
  }
  func.func @transform_5(%arg0: i32, %arg1: i32) -> (i32, i32) {
    %c0_i32 = arith.constant 0 : i32
    %c0_i32_0 = arith.constant 0 : i32
    %c0_i32_1 = arith.constant 0 : i32
    return %c0_i32, %c0_i32_0 : i32, i32
  }
  func.func @transform_6(%arg0: i32, %arg1: i32) -> (i32, i32) {
    %c0_i32 = arith.constant 0 : i32
    %c0_i32_0 = arith.constant 0 : i32
    %c0_i32_1 = arith.constant 0 : i32
    return %c0_i32, %c0_i32_0 : i32, i32
  }
  func.func @transform_7(%arg0: i32, %arg1: i32) -> (i32, i32) {
    %c0_i32 = arith.constant 0 : i32
    %c0_i32_0 = arith.constant 0 : i32
    %c0_i32_1 = arith.constant 0 : i32
    return %c0_i32, %c0_i32_0 : i32, i32
  }
  func.func @transform_8(%arg0: i32, %arg1: i32) -> (i32, i32, i32) {
    %c0_i32 = arith.constant 0 : i32
    %c0_i32_0 = arith.constant 0 : i32
    return %arg0, %c0_i32, %arg1 : i32, i32, i32
  }
}

</mosaic_0001>

<bundles_post_ra>
// kernel: tpu_custom_call.1
= control target key start
LH: loop header
LB: loop body
LE: loop exit
PB: predicated region body
PF: predicated region fallthrough
CT: control target
= control target key end

     0   :  { %s888_s29 = smov 0   ;;  %s890_s30 = smov 0   ;;  %s993_s0 = inlined_call_operand.<no memory space> [shape: f32[1], index: 0, kind: input, shape index: {}]   ;;  %s994_s1 = inlined_call_operand.vmem [shape: f32[2,16,32], index: 1, kind: input, shape index: {}]   ;;  %s995_s2 = inlined_call_operand.vmem [shape: f32[2,8,32], index: 2, kind: input, shape index: {}]   ;;  %s996_s3 = inlined_call_operand.vmem [shape: f32[2,1,8], index: 3, kind: input, shape index: {}]   ;;  %s997_s4 = inlined_call_operand.vmem [shape: f32[1,32], index: 4, kind: input, shape index: {}]   ;;  %s998_s5 = inlined_call_operand.vmem [shape: f32[1,32], index: 5, kind: input, shape index: {}]   ;;  %s999_s6 = inlined_call_operand.vmem [shape: f32[33,32], index: 6, kind: input, shape index: {}]   ;;  %s1000_s7 = inlined_call_operand.vmem [shape: f32[32,1], index: 7, kind: input, shape index: {}]   ;;  %s1001_s8 = inlined_call_operand.vmem [shape: f32[2,32,16], index: 8, kind: output, shape index: {}]  }
   0x1   :  { %13 = sst [smem:[#allocation5]] %s993_s0  ;;  %s892_s9 = smov 0  }
   0x2 LB: > { %s31_s0 = sadd.s32 1, %s833_s30  ;;  %p746_p0 = scmp.ge.s32.totalorder %s837_s9, 1  ;;  %s837_s9 = sphi %s892_s9, %s19_s9   ;;  %s833_s30 = sphi %s890_s30, %s1003_s30   ;;  %s829_s29 = sphi %s888_s29, %s1002_s29  }
   0x3   : > { %p33_p1 = scmp.ge.s32.totalorder %s31_s0, 2  ;;  %p301_p2 = scmp.lt.s32.totalorder %s837_s9, 3 }
   0x5   : > { %s1005_s0 = smov (%p33_p1, %s31_s0), 0  ;;  %p302_p3 = pnand %p746_p0, %p301_p2 }
   0x6   : > { %p350_p4 = scmp.lt.s32.totalorder (!%p302_p3), %s829_s29, 1  ;;  %s447_s26 = sld [smem:[#allocation5]] (!%p302_p3) }
   0x7   : > { %305 = sbr.rel (%p302_p3) target bundleno = 481 (0x1e1), region = 52 }
   0xc   : > { %s1007_s29 = smov (!%p350_p4, %s829_s29), 1  ;;  %v804_v0 = vld [vmem:[%s998_s5] ss:$0 sm:$0xff]  ;;  %vm384_vm0 = vcmask 261120   ;;  %v389_v5 = vld [vmem:[%s999_s6 + $0x18] sm:$0xff]  ;;  %v839_v13 = vmov 0   ;;  %v448_v18 = vstv %s447_s26 }
   0xd   : > { %v805_v1 = vld [vmem:[%s997_s4] ss:$0 sm:$0xff]  ;;  %s749_s14 = sshll.u32 %s1007_s29, 3  ;;  %s771_s15 = sshll.u32 %s1007_s29, 4  ;;  %802 = vset.pattern.permute.xlu0 %v839_v13  ;;  %803 = vset.pattern.permute.xlu1 %v839_v13  ;;  %vm442_vm1 = vcmask 64512   ;;  %vm450_vm2 = vcmask 57344  }
   0xe   : > { %s362_s18 = scalar_lea.vmem %s995_s2, %s749_s14  ;;  %s357_s21 = scalar_lea.vmem %s994_s1, %s771_s15  ;;  %v390_v10 = vld [vmem:[%s999_s6 + $0x20] sm:$0x1]  ;;  %801 = vset.pattern.permute.xlu2 %v839_v13  ;;  %v387_v22 = vld [vmem:[%s999_s6 + $0x8] sm:$0xff]  ;;  %v388_v30 = vld [vmem:[%s999_s6 + $0x10] sm:$0xff]  ;;  %vm633_vm13 = vcmask 130048  }
   0xf   : > { %v379_v2 = vld [vmem:[%s362_s18] sm:$0xff]  ;;  %v453_v3 = vld [vmem:[%s357_s21 + $0x8] sm:$0xff]  ;;  %s365_s12 = scalar_lea.vmem %s996_s3, %s1007_s29  ;;  %v564_v57 = vld [vmem:[%s1000_s7 + $0x10] sm:$0xff]  ;;  %s772_s25 = sshll.u32 %s1007_s29, 5 }
  0x10   : > { %v383_v4 = vmul.f32 %v804_v0, %v379_v2  ;;  %773 = vmatpush.xpose.msk.msra.mxu3 %vm384_vm0, %v379_v2  ;;  %v459_v6 = vmul.f32 %v805_v1, %v453_v3  ;;  %752 = vmatpush.xpose.msk.msra.mxu0 %vm384_vm0, %v379_v2  ;;  %v452_v8 = vld [vmem:[%s357_s21] sm:$0xff]  ;;  %v565_v59 = vld [vmem:[%s1000_s7 + $0x18] sm:$0xff]  ;;  %s373_s28 = scalar_lea.vmem %s1001_s8, %s772_s25 }
  0x11   : > { %v458_v9 = vmul.f32 %v805_v1, %v452_v8  ;;  %v386_v16 = vld [vmem:[%s999_s6] sm:$0xff] }
  0x12   : > { %385 = vst.msk [vmem:[#allocation2] sm:$0xff] %vm384_vm0, %v383_v4  ;;  %v464_v7 = vsel %vm384_vm0, %v459_v6, 0.0  ;;  %v510_v20 = vld [vmem:[%s365_s12] sm:$0x1]  ;;  %v563_v4 = vld [vmem:[%s1000_s7 + $0x8] sm:$0xff] }
  0x13   : > { %756 = vmatmul.msk.f32.vlgmr.msra.gmra.mxu3 %vm384_vm0, %v389_v5  ;;  %465 = vadd.xlane.f32.xlu0 %v464_v7  ;;  %v461_v11 = vsel %vm384_vm0, %v458_v9, 0.0  ;;  %vm511_vm3 = vcmp.eq.f32.partialorder %v510_v20, 0.0  ;;  %v562_v58 = vld [vmem:[%s1000_s7] sm:$0xff] }
  0x14   : > { %753 = vmatmul.msk.f32.vlgmr.msra.gmra.mxu0 %vm384_vm0, %v386_v16  ;;  %v512_v24 = vsel %vm511_vm3, 1, %v839_v13  ;;  %568 = vperm.xlu2 %801, %v562_v58  }
  0x15   : > { %v513_v27 = vperm.slane %v512_v24, 0 }
  0x17   : > { %vm514_vm4 = vcmp.eq.s32.totalorder %v513_v27, 1 }
  0x19   : > { %v467_v12 = vld [vmem:[#allocation2] sm:$0xff] }
  0x1a   : > { %758 = vmatpush.xpose.msk.msra.mxu1 %vm384_vm0, %v467_v12 }
  0x1b   : > { %757 = vmatmul.msk.f32.gmra.mxu3 %vm384_vm0, %v390_v10  ;;  %462 = vadd.xlane.f32.xlu0 %v461_v11 }
  0x1c   : > { %754 = vmatmul.msk.f32.gmra.mxu0 %vm384_vm0, %v387_v22  ;;  %573 = vperm.xlu2 %801, %v563_v4  }
  0x1d   : > { %759 = vmatmul.msk.f32.vlgmr.msra.gmra.mxu1 %vm384_vm0, %v452_v8 }
  0x24   : > { %755 = vmatmul.msk.f32.gmra.mxu0 %vm384_vm0, %v388_v30 }
  0x25   : > { %760 = vmatmul.msk.f32.gmra.mxu1 %vm384_vm0, %v453_v3 }
  0x2f   : > { %578 = vperm.xlu0 %802, %v564_v57  }
  0x86   : > { %v466_v17 = vpop.xlane.xlu0 %465 }
  0x8e   : > { %v463_v25 = vpop.xlane.xlu0 %462 }
  0x91   : > { %v427_v43 = vpop.f32.mrf.mxu0 }
  0x92   : > { %443 = vst.msk [vmem:[#allocation3] sm:$0xff] %vm442_vm1, %v427_v43 }
  0x96   : > { %v436_v14 = vpop.f32.mrf.mxu3 }
  0x97   : > { %446 = vst.msk [vmem:[#allocation3 + $0x18] sm:$0xff] %vm442_vm1, %v436_v14  ;;  %v569_v14 = vpop.permute.xlu2 %568 }
  0x99   : > { %v430_v44 = vpop.f32.mrf.mxu0  ;;  %v558_v11 = vld [vmem:[#allocation3] sm:$0xff] }
  0x9a   : > { %v494_v15 = vpop.f32.mrf.mxu1  ;;  %444 = vst.msk [vmem:[#allocation3 + $0x8] sm:$0xff] %vm442_vm1, %v430_v44 }
  0x9b   : > { %v495_v29 = vadd.f32 %v494_v15, %v463_v25 }
  0x9e   : > { %v439_v19 = vpop.f32.mrf.mxu3  ;;  %v561_v13 = vld [vmem:[#allocation3 + $0x18] sm:$0xff] }
  0x9f   : > { %v449_v21 = vadd.f32 %v448_v18, %v439_v19 }
  0xa1   : > { %451 = vst.msk [vmem:[#allocation4] sm:$0x1] %vm450_vm2, %v449_v21  ;;  %v433_v45 = vpop.f32.mrf.mxu0  ;;  %v559_v10 = vld [vmem:[#allocation3 + $0x8] sm:$0xff]  ;;  %v579_v20 = vpop.permute.xlu0 %578 }
  0xa2   : > { %v497_v23 = vpop.f32.mrf.mxu1  ;;  %445 = vst.msk [vmem:[#allocation3 + $0x10] sm:$0xff] %vm442_vm1, %v433_v45 }
  0xa3   : > { %v498_v26 = vadd.f32 %v497_v23, %v466_v17  ;;  %v574_v17 = vpop.permute.xlu2 %573 }
  0xa8   : > { %v806_v28 = vld [vmem:[#allocation4] ss:$0 sm:$0xff] }
  0xa9   : > { %v504_v31 = vadd.f32 %v806_v28, %v495_v29  ;;  %v505_v32 = vadd.f32 %v806_v28, %v498_v26  ;;  %v560_v12 = vld [vmem:[#allocation3 + $0x10] sm:$0xff] }
  0xab   : > { %v762_v33 = vclamps-f32 %v505_v32, 15.0  ;;  %v761_v34 = vclamps-f32 %v504_v31, 15.0 }
  0xad   : > { %v516_v35 = vsel %vm514_vm4, -inf, %v762_v33  ;;  %v515_v37 = vsel %vm514_vm4, -inf, %v761_v34 }
  0xae   : > { %v519_v36 = vmul.f32 1.442695, %v516_v35  ;;  %v517_v38 = vmul.f32 1.442695, %v515_v37 }
  0xb0   : > { %807 = vpow2.f32 %v519_v36 }
  0xb1   : > { %809 = vpow2.f32 %v517_v38 }
  0xb6   : > { %v808_v39 = vpop.eup %807 }
  0xb7   : > { %v525_v40 = vsel %vm442_vm1, %v808_v39, 0.0  ;;  %v810_v41 = vpop.eup %809 }
  0xb8   : > { %526 = vadd.xlane.f32.xlu1 %v525_v40  ;;  %v522_v42 = vsel %vm442_vm1, %v810_v41, 0.0 }
  0xc0   : > { %523 = vadd.xlane.f32.xlu1 %v522_v42 }
  0xd9   : > { %583 = vperm.xlu1 %803, %v565_v59  }
 0x12b   : > { %v527_v46 = vpop.xlane.xlu1 %526 }
 0x12c   : > { %811 = vrcp.f32 %v527_v46  ;;  %v553_v51 = vand.u32 2147483648, %v527_v46  ;;  %v551_v53 = vand.u32 2147483647, %v527_v46  ;;  %vm547_vm6 = vweird.f32 %v527_v46 }
 0x12e   : > { %v554_v56 = vor.u32 1.1754944e-38, %v553_v51  ;;  %vm552_vm8 = vcmp.eq.f32.partialorder %v551_v53, 8.507059e+37 }
 0x132   : > { %v812_v47 = vpop.eup %811 }
 0x133   : > { %v543_v48 = vmul.f32 %v812_v47, %v527_v46  ;;  %v524_v49 = vpop.xlane.xlu1 %523  ;;  %vm548_vm5 = vweird.f32 %v812_v47 }
 0x134   : > { %813 = vrcp.f32 %v524_v49  ;;  %vm549_vm7 = vmor %vm547_vm6, %vm548_vm5  ;;  %v539_v1 = vand.u32 2147483648, %v524_v49  ;;  %v537_v3 = vand.u32 2147483647, %v524_v49  ;;  %vm533_vm10 = vweird.f32 %v524_v49 }
 0x135   : > { %v544_v50 = vsub.f32 1.0, %v543_v48 }
 0x136   : > { %v540_v6 = vor.u32 1.1754944e-38, %v539_v1  ;;  %vm538_vm12 = vcmp.eq.f32.partialorder %v537_v3, 8.507059e+37 }
 0x137   : > { %v545_v52 = vmul.f32 %v812_v47, %v544_v50 }
 0x139   : > { %v546_v54 = vadd.f32 %v812_v47, %v545_v52 }
 0x13a   : > { %v814_v55 = vpop.eup %813 }
 0x13b   : > { %v529_v60 = vmul.f32 %v814_v55, %v524_v49  ;;  %v550_v61 = vsel %vm549_vm7, %v812_v47, %v546_v54  ;;  %vm534_vm9 = vweird.f32 %v814_v55 }
 0x13c   : > { %v555_v62 = vsel %vm552_vm8, %v554_v56, %v550_v61  ;;  %vm535_vm11 = vmor %vm533_vm10, %vm534_vm9 }
 0x13d   : > { %v530_v63 = vsub.f32 1.0, %v529_v60  ;;  %v557_v0 = vmul.f32 %v808_v39, %v555_v62 }
 0x13f   : > { %v531_v2 = vmul.f32 %v814_v55, %v530_v63  ;;  %763 = vmatpush.xpose.msk.msrb.mxu1 %vm442_vm1, %v557_v0  ;;  %774 = vmatpush.xpose.msk.msra.mxu2 %vm442_vm1, %v557_v0 }
 0x141   : > { %v532_v5 = vadd.f32 %v814_v55, %v531_v2 }
 0x143   : > { %v536_v7 = vsel %vm535_vm11, %v814_v55, %v532_v5 }
 0x144   : > { %v541_v8 = vsel %vm538_vm12, %v540_v6, %v536_v7 }
 0x145   : > { %v556_v9 = vmul.f32 %v810_v41, %v541_v8 }
 0x147   : > { %764 = vmatpush.xpose.msk.msrb.mxu1 %vm442_vm1, %v556_v9  ;;  %775 = vmatpush.xpose.msk.msra.mxu2 %vm442_vm1, %v556_v9 }
 0x14a   : > { %765 = vmatmul.msk.f32.vlgmr.msrb.gmra.mxu1 %vm442_vm1, %v558_v11  ;;  %766 = vmatmul.msk.f32.vlgmr.msra.gmra.mxu2 %vm442_vm1, %v559_v10 }
 0x14b   : > { %v584_v23 = vpop.permute.xlu1 %583 }
 0x152   : > { %767 = vmatmul.msk.f32.gmra.mxu2 %vm442_vm1, %v560_v12 }
 0x15a   : > { %768 = vmatmul.msk.f32.gmra.mxu2 %vm442_vm1, %v561_v13 }
 0x1c7   : > { %v621_v15 = vpop.f32.mrf.mxu1 }
 0x1c8   : > { %v622_v16 = vadd.f32 %v621_v15, %v569_v14 }
 0x1ca   : > { %634 = vst.msk [vmem:[%s373_s28] sm:$0xff] %vm633_vm13, %v622_v16 }
 0x1cd   : > { %v624_v18 = vpop.f32.mrf.mxu2 }
 0x1ce   : > { %v625_v19 = vadd.f32 %v624_v18, %v574_v17 }
 0x1d0   : > { %635 = vst.msk [vmem:[%s373_s28 + $0x8] sm:$0xff] %vm633_vm13, %v625_v19 }
 0x1d5   : > { %v627_v21 = vpop.f32.mrf.mxu2 }
 0x1d6   : > { %v628_v22 = vadd.f32 %v627_v21, %v579_v20 }
 0x1d8   : > { %636 = vst.msk [vmem:[%s373_s28 + $0x10] sm:$0xff] %vm633_vm13, %v628_v22 }
 0x1dd   : > { %v630_v24 = vpop.f32.mrf.mxu2 }
 0x1de   : > { %v631_v25 = vadd.f32 %v630_v24, %v584_v23 }
 0x1e0   : > { %637 = vst.msk [vmem:[%s373_s28 + $0x18] sm:$0xff] %vm633_vm13, %v631_v25 }
 0x1e1 PF: > { %s19_s9 = sadd.s32 1, %s837_s9   ;;  %s1002_s29 = smov %s833_s30 }
 0x1e2   : > { %p16_p5 = scmp.ge.s32.totalorder %s19_s9, 4   ;;  %s1003_s30 = smov %s1005_s0 }
 0x1e4   :  { %18 = sbr.rel (!%p16_p5) target bundleno = 2 (0x2), region = 92 }

</bundles_post_ra>
